<compile_context>
chip_gen: v7x
topology: tpu7x:2x2x1
jax: 0.10.0
libtpu: 0.0.40
codegen_flags: <defaults>
</compile_context>

<pallas_src>
import jax
import jax.numpy as jnp
from jax.experimental import pallas as pl
from jax.experimental.pallas import tpu as pltpu


def _round_up(x, m):
    return ((x + m - 1) // m) * m


def _sublane_multiple(dtype):
    # Minimum second-to-last tile dim: 8 for 32-bit, 16 for 16-bit, 32 for 8-bit.
    return max(8, 32 // jnp.dtype(dtype).itemsize)


def _packing_factor(M, K):
    """Largest power-of-two P with P*K <= 128, K | 128 and P | M."""
    if K <= 128 and 128 % K == 0:
        p = 128 // K                      # power of two since K | 128
        while p > 1 and M % p != 0:
            p //= 2
        return p
    return 1                              # K already lane-wide / irregular


# ----------------------------------------------------------------------------
# Kernel A: row-major activations x[M, K] (PyTorch layout), lane-packed to
# x_pk[M/P, P*K] in the wrapper.  One MXU dot against the resident
# block-diagonal weight produces the (tm, P) output tile.
# ----------------------------------------------------------------------------
def _hsvm_kernel_packed(x_ref, w_ref, b_ref, o_ref):
    # x_ref: (tm, P*K) VMEM   w_ref: (P*K, P) f32 VMEM (resident)
    # b_ref: (1,) f32 SMEM    o_ref: (tm, P) f32 VMEM
    x = x_ref[...].astype(jnp.float32)
    acc = jnp.dot(x, w_ref[...], preferred_element_type=jnp.float32)
    o_ref[...] = acc + b_ref[0]


def hsvm_forward(x, w, b, *, block_bytes=4 * 1024 * 1024):
    """x: [M, K] (f32 or bf16), w: K weights, b: scalar -> [M, 1] f32."""
    M, K = x.shape
    P = _packing_factor(M, K)
    Mp, L = M // P, P * K

    # Free, contiguous reshape (no HBM pass): rows j*K..(j+1)*K of packed row i
    # hold original row i*P + j.
    x_pk = x.reshape(Mp, L)

    # Block-diagonal weight, kept in f32 (resident, zero perf cost).
    w_vec = jnp.asarray(w, jnp.float32).reshape(K)
    eye = jnp.eye(P, dtype=jnp.float32)
    w_bd = (eye[:, None, :] * w_vec[None, :, None]).reshape(L, P)
    b_s = jnp.asarray(b, jnp.float32).reshape(1)

    # Tile sizing: target `block_bytes` of x per grid step, but keep >= 2 grid
    # steps for large batches (v7x megacore), dtype-aware sublane alignment.
    sub = _sublane_multiple(x.dtype)
    bytes_per_row = L * jnp.dtype(x.dtype).itemsize
    tm = max(1, block_bytes // bytes_per_row)
    tm = min(tm, pl.cdiv(Mp, 2))
    tm = _round_up(tm, sub)
    if tm >= Mp:
        tm = Mp                           # tiny batch: one full-array block
    grid = (pl.cdiv(Mp, tm),)             # ragged tail -> partial boundary block

    out = pl.pallas_call(
        _hsvm_kernel_packed,
        out_shape=jax.ShapeDtypeStruct((Mp, P), jnp.float32),
        grid_spec=pltpu.PrefetchScalarGridSpec(
            num_scalar_prefetch=0,
            grid=grid,
            in_specs=[
                pl.BlockSpec((tm, L), lambda i: (i, 0)),              # x tile
                pl.BlockSpec((L, P), lambda i: (0, 0)),               # resident weight
                pl.BlockSpec(memory_space=pltpu.MemorySpace.SMEM),    # bias scalar
            ],
            out_specs=pl.BlockSpec((tm, P), lambda i: (i, 0)),
        ),
        compiler_params=pltpu.CompilerParams(
            dimension_semantics=("parallel",),     # batch axis -> megacore on v7x
            vmem_limit_bytes=32 * 1024 * 1024,     # explicit (v5e default is 16 MiB)
        ),
    )(x_pk, w_bd, b_s)
    return out.reshape(M, 1)              # free, contiguous reshape


# ----------------------------------------------------------------------------
# Kernel B: feature-major activations x_t[K, M] (already lane-dense).
# Batch on the lane axis, sublane reduce over K, lane-dense (1, tm) outputs.
# ----------------------------------------------------------------------------
def _hsvm_kernel_featmajor(xt_ref, w_ref, b_ref, o_ref):
    # xt_ref: (K, tm) VMEM   w_ref: (K, 1) f32 VMEM   b_ref: (1,) SMEM
    # o_ref: (1, tm) f32 VMEM
    prod = xt_ref[...].astype(jnp.float32) * w_ref[...]
    o_ref[...] = jnp.sum(prod, axis=0, keepdims=True) + b_ref[0]


def hsvm_forward_t(x_t, w, b, *, block_bytes=4 * 1024 * 1024):
    """x_t: [K, M] feature-major activations -> [M, 1] f32."""
    K, M = x_t.shape
    w_col = jnp.asarray(w, jnp.float32).reshape(K, 1)
    b_s = jnp.asarray(b, jnp.float32).reshape(1)

    bytes_per_col = K * jnp.dtype(x_t.dtype).itemsize
    tm = max(1, block_bytes // bytes_per_col)
    tm = min(tm, pl.cdiv(M, 2))           # >= 2 grid steps for large batches (v7x)
    tm = _round_up(tm, 128)               # lane-axis tiles: multiple of 128
    if tm >= M:
        tm = M                            # single full-array block for tiny batches
    grid = (pl.cdiv(M, tm),)              # ragged tail -> partial boundary block

    out = pl.pallas_call(
        _hsvm_kernel_featmajor,
        out_shape=jax.ShapeDtypeStruct((1, M), jnp.float32),
        grid_spec=pltpu.PrefetchScalarGridSpec(
            num_scalar_prefetch=0,
            grid=grid,
            in_specs=[
                pl.BlockSpec((K, tm), lambda i: (0, i)),              # x_t tile
                pl.BlockSpec((K, 1), lambda i: (0, 0)),               # resident weight
                pl.BlockSpec(memory_space=pltpu.MemorySpace.SMEM),    # bias scalar
            ],
            out_specs=pl.BlockSpec((1, tm), lambda i: (0, i)),        # lane-dense
        ),
        compiler_params=pltpu.CompilerParams(
            dimension_semantics=("parallel",),
            vmem_limit_bytes=32 * 1024 * 1024,
        ),
    )(x_t, w_col, b_s)
    return out.reshape(M, 1)              # free, contiguous reshape


if __name__ == "__main__":
    # HSVM(n=31, mode='hyperbolic') -> Linear(in_features=32, out_features=1)
    n = 31
    in_features = n + 1                   # hyperboloid lives in n+1 dims
    batch = 16

    key = jax.random.PRNGKey(0)
    kx, kw, kb = jax.random.split(key, 3)
    x = jax.random.normal(kx, (batch, in_features), dtype=jnp.float32)

    # nn.Linear default init: uniform(-1/sqrt(fan_in), 1/sqrt(fan_in))
    bound = 1.0 / jnp.sqrt(jnp.float32(in_features))
    w = jax.random.uniform(kw, (in_features,), dtype=jnp.float32,
                           minval=-bound, maxval=bound)
    b = jax.random.uniform(kb, (), dtype=jnp.float32,
                           minval=-bound, maxval=bound)

    ref = x @ w.reshape(-1, 1) + b

    # Primary (PyTorch-layout) kernel, toy batch -> single full block.
    out = jax.block_until_ready(hsvm_forward(x, w, b))
    assert out.shape == (batch, 1)
    assert jnp.allclose(out, ref, atol=1e-5, rtol=1e-5)

    # Lane-dense feature-major variant on the same data.
    out_t = jax.block_until_ready(hsvm_forward_t(x.T, w, b))
    assert out_t.shape == (batch, 1)
    assert jnp.allclose(out_t, ref, atol=1e-5, rtol=1e-5)

    # Ragged multi-block path: small byte budget forces several grid steps and
    # a partial boundary block (no padding pass anywhere).
    batch2 = 300
    x2 = jax.random.normal(jax.random.PRNGKey(1), (batch2, in_features),
                           dtype=jnp.float32)
    ref2 = x2 @ w.reshape(-1, 1) + b
    out2 = jax.block_until_ready(hsvm_forward(x2, w, b, block_bytes=64 * 1024))
    out2_t = jax.block_until_ready(hsvm_forward_t(x2.T, w, b, block_bytes=16 * 1024))
    assert jnp.allclose(out2, ref2, atol=1e-5, rtol=1e-5)
    assert jnp.allclose(out2_t, ref2, atol=1e-5, rtol=1e-5)

    # Odd batch -> packing-factor fallback (P=1), still pad-free.
    batch3 = 301
    x3 = jax.random.normal(jax.random.PRNGKey(2), (batch3, in_features),
                           dtype=jnp.float32)
    ref3 = x3 @ w.reshape(-1, 1) + b
    out3 = jax.block_until_ready(hsvm_forward(x3, w, b, block_bytes=64 * 1024))
    assert jnp.allclose(out3, ref3, atol=1e-5, rtol=1e-5)

    # bf16 activations halve the HBM read; weights / accumulation / output stay f32.
    out2_bf = jax.block_until_ready(
        hsvm_forward(x2.astype(jnp.bfloat16), w, b, block_bytes=64 * 1024))
    assert out2_bf.dtype == jnp.float32
    assert jnp.allclose(out2_bf, ref2, atol=5e-2, rtol=5e-2)

    print("KERNEL_OK")
</pallas_src>

<mosaic_0001>
module attributes {stable_mosaic.version = 11 : i64} {
  func.func @_hsvm_kernel_packed(%arg0: i32, %arg1: memref<4x128xf32, #tpu.memory_space<vmem>>, %arg2: memref<128x4xf32, #tpu.memory_space<vmem>>, %arg3: memref<1xf32, #tpu.memory_space<smem>>, %arg4: memref<4x4xf32, #tpu.memory_space<vmem>>) attributes {dimension_semantics = [#tpu.dimension_semantics<parallel>], iteration_bounds = array<i64: 1>, scalar_prefetch = 0 : i64, scratch_operands = 0 : i64, tpu.core_type = #tpu.core_type<tc>, window_params = [{transform_indices = @transform_0, window_bounds = array<i64: 4, 128>}, {pipeline_mode = #tpu.pipeline_mode<synchronous>, transform_indices = @transform_1, window_bounds = array<i64: 128, 4>}, {transform_indices = @transform_2, window_bounds = array<i64: 1>}, {transform_indices = @transform_3, window_bounds = array<i64: 4, 4>}]} {
    %c0 = arith.constant 0 : index
    %c0_0 = arith.constant 0 : index
    %0 = vector.load %arg1[%c0, %c0_0] : memref<4x128xf32, #tpu.memory_space<vmem>>, vector<4x128xf32>
    %c0_1 = arith.constant 0 : index
    %c0_2 = arith.constant 0 : index
    %1 = vector.load %arg2[%c0_1, %c0_2] : memref<128x4xf32, #tpu.memory_space<vmem>>, vector<128x4xf32>
    %cst = arith.constant dense<0.000000e+00> : vector<4x4xf32>
    %2 = tpu.matmul %0, %1, %cst {dimension_numbers = #tpu.dot_dimension_numbers<[1], [0], [0], [1], [0, 0, 1, 1], [], []>} : vector<4x128xf32>, vector<128x4xf32>, vector<4x4xf32> -> vector<4x4xf32>
    %c0_3 = arith.constant 0 : index
    %3 = memref.load %arg3[%c0_3] : memref<1xf32, #tpu.memory_space<smem>>
    %4 = vector.broadcast %3 : f32 to vector<4x4xf32>
    %5 = arith.addf %2, %4 : vector<4x4xf32>
    %c0_4 = arith.constant 0 : index
    %c0_5 = arith.constant 0 : index
    %6 = vector.load %arg4[%c0_4, %c0_5] : memref<4x4xf32, #tpu.memory_space<vmem>>, vector<4x4xf32>
    tpu.vector_store %arg4[%c0_4, %c0_5], %5 {strides = array<i32>} : memref<4x4xf32, #tpu.memory_space<vmem>>, vector<4x4xf32>,
    return
  }
  func.func @transform_0(%arg0: i32) -> (i32, i32) {
    %c0_i32 = arith.constant 0 : i32
    %c0_i32_0 = arith.constant 0 : i32
    return %arg0, %c0_i32 : i32, i32
  }
  func.func @transform_1(%arg0: i32) -> (i32, i32) {
    %c0_i32 = arith.constant 0 : i32
    %c0_i32_0 = arith.constant 0 : i32
    %c0_i32_1 = arith.constant 0 : i32
    return %c0_i32, %c0_i32_0 : i32, i32
  }
  func.func @transform_2(%arg0: i32) -> i32 {
    %c0_i32 = arith.constant 0 : i32
    %c0_i32_0 = arith.constant 0 : i32
    return %c0_i32 : i32
  }
  func.func @transform_3(%arg0: i32) -> (i32, i32) {
    %c0_i32 = arith.constant 0 : i32
    %c0_i32_0 = arith.constant 0 : i32
    return %arg0, %c0_i32 : i32, i32
  }
}

</mosaic_0001>

<bundles_post_ra>
// kernel: tpu_custom_call.1
= control target key start
LH: loop header
LB: loop body
LE: loop exit
PB: predicated region body
PF: predicated region fallthrough
CT: control target
= control target key end

     0   :  { %v225_v3 = vmov 0.0|0.0   ;;  %vm226_vm0 = vmmov 0   ;;  %v227_v6 = vmov 0.0   ;;  %s315_s0 = inlined_call_operand.vmem [shape: f32[4,128], index: 0, kind: input, shape index: {}]   ;;  %s316_s1 = inlined_call_operand.vmem [shape: f32[128,4], index: 1, kind: input, shape index: {}]   ;;  %s317_s2 = inlined_call_operand.<no memory space> [shape: f32[1], index: 2, kind: input, shape index: {}]   ;;  %s318_s3 = inlined_call_operand.hbm [shape: f32[4,4], index: 3, kind: output, shape index: {}]  }
   0x1   :  { %v17_v0 = vld [vmem:[%s316_s1] sm:$0xff]  ;;  %v18_v1 = vld [vmem:[%s316_s1 + $0x8] sm:$0xff]  ;;  %v19_v2 = vld [vmem:[%s316_s1 + $0x10] sm:$0xff]  ;;  %173 = vmatprep.subr.bf16.mxu0 %v225_v3  ;;  %170 = vmatprep.mubr.msk.f32.mxu0 %vm226_vm0, %v227_v6 }
   0x2   :  { %v174_v4 = vpack.c.bf16 %v18_v1, %v17_v0  ;;  %v20_v5 = vld [vmem:[%s316_s1 + $0x18] sm:$0xff]  ;;  %v21_v8 = vld [vmem:[%s316_s1 + $0x20] sm:$0xff]  ;;  %v22_v9 = vld [vmem:[%s316_s1 + $0x28] sm:$0xff] }
   0x3   :  { %v177_v7 = vpack.c.bf16 %v20_v5, %v19_v2 }
   0x4   :  { %175 = vmatpush3.bf16.msra.mxu0 %v174_v4 }
   0x5   :  { %176 = vmatprep.subr.bf16.mxu0 %v225_v3 }
   0x6   :  { %9 = vsyncpa [#allocation4], 0  ;;  %v180_v10 = vpack.c.bf16 %v22_v9, %v21_v8  ;;  %v23_v11 = vld [vmem:[%s316_s1 + $0x30] sm:$0xff]  ;;  %v24_v12 = vld [vmem:[%s316_s1 + $0x38] sm:$0xff]  ;;  %v34_v27 = vstv %s317_s2  ;;  %s228_s21 = smov [#allocation3]   ;;  %vm105_vm1 = vcmask 27648  }
   0x7   :  { %v183_v13 = vpack.c.bf16 %v24_v12, %v23_v11  ;;  %v25_v14 = vld [vmem:[%s316_s1 + $0x40] sm:$0xff]  ;;  %v26_v15 = vld [vmem:[%s316_s1 + $0x48] sm:$0xff]  ;;  %v27_v17 = vld [vmem:[%s316_s1 + $0x50] sm:$0xff]  ;;  %s113_s22 = sshll.u32 %s228_s21, 4  ;;  %s114_s22 = int_to_ptr.vmem [resolvable:$true] %s113_s22 }
   0x8   :  { %178 = vmatpush3.bf16.msra.mxu0 %v177_v7  ;;  %v186_v16 = vpack.c.bf16 %v26_v15, %v25_v14  ;;  %v28_v18 = vld [vmem:[%s316_s1 + $0x58] sm:$0xff]  ;;  %v29_v20 = vld [vmem:[%s316_s1 + $0x60] sm:$0xff]  ;;  %v30_v21 = vld [vmem:[%s316_s1 + $0x68] sm:$0xff]  ;;  %p206_p1 = scmp.lt.s32.totalorder %s114_s22, %s114_s22 }
   0x9   :  { %179 = vmatprep.subr.bf16.mxu0 %v225_v3  ;;  %v189_v19 = vpack.c.bf16 %v28_v18, %v27_v17  ;;  %v192_v22 = vpack.c.bf16 %v30_v21, %v29_v20  ;;  %v31_v23 = vld [vmem:[%s316_s1 + $0x70] sm:$0xff]  ;;  %v32_v24 = vld [vmem:[%s316_s1 + $0x78] sm:$0xff]  ;;  %v16_v26 = vld [vmem:[%s315_s0] sm:$0xf]  ;;  %s201_s1 = scalar_lea.vmem %s114_s22, 64 }
   0xa   :  { %v195_v25 = vpack.c.bf16 %v32_v24, %v31_v23  ;;  %p202_p0 = scmp.ne.s32.totalorder %s114_s22, %s201_s1  ;;  %p207_p2 = scmp.lt.s32.totalorder %s201_s1, %s201_s1 }
   0xc   :  { %181 = vmatpush3.bf16.msra.mxu0 %v180_v10  ;;  %p208_p3 = por %p207_p2, %p206_p1 }
   0xd   :  { %182 = vmatprep.subr.bf16.mxu0 %v225_v3 }
   0xe   :  { %p209_p4 = pnand %p208_p3, %p202_p0 }
  0x10   :  { %184 = vmatpush3.bf16.msra.mxu0 %v183_v13 }
  0x11   :  { %185 = vmatprep.subr.bf16.mxu0 %v225_v3 }
  0x14   :  { %187 = vmatpush3.bf16.msra.mxu0 %v186_v16 }
  0x15   :  { %188 = vmatprep.subr.bf16.mxu0 %v225_v3 }
  0x18   :  { %190 = vmatpush3.bf16.msra.mxu0 %v189_v19 }
  0x19   :  { %191 = vmatprep.subr.bf16.mxu0 %v225_v3 }
  0x1c   :  { %193 = vmatpush3.bf16.msra.mxu0 %v192_v22 }
  0x1d   :  { %194 = vmatprep.subr.bf16.mxu0 %v225_v3 }
  0x20   :  { %196 = vmatpush3.bf16.msra.mxu0 %v195_v25 }
  0x23   :  { %171 = vmatmul.mubr.f32.vlgmr.msra.gmra.mrb[0].mxu0 %v16_v26 }
  0xf6   :  { %v101_v28 = vpop.f32.mrb[0].mxu0 }
  0xf7   :  { %v102_v29 = vadd.f32 %v101_v28, %v34_v27  ;;  %v172_v30 = vpop.f32.mrb[1].mxu0 }
  0xf9   :  { %106 = vst.msk [vmem:[#allocation3] sm:$0xf] %vm105_vm1, %v102_v29 }
  0xfa   :  { %212 = shalt.err (!%p209_p4)
}
  0xfb   :  { %s213_s24 = scalar_lea.hbm %s318_s3, 64 }
  0xfc   :  { %p214_p5 = scmp.ne.s32.totalorder %s318_s3, %s213_s24  ;;  %p217_p6 = scmp.lt.u32.totalorder %s213_s24, %s318_s3 }
  0xfe   :  { %p219_p7 = pnand %p217_p6, %p214_p5 }
 0x100   :  { %222 = shalt.err (!%p219_p7)
}
 0x101   :  { %116 = dma.vmem_to_hbm [thread:$0]  %s114_s22, 64, %s318_s3, [#allocation4]  }
 0x102   :  { %223 = dma.done.wait [#allocation4], 64  }
 0x103   :  { %224 = vsyncadd [#allocation4], 4294967232 }
 0x104   :  { %120 = vsyncpa [#allocation4], 1 }

</bundles_post_ra>
